<compile_context>
chip_gen: v7x
topology: tpu7x:2x2x1
jax: 0.10.0
libtpu: 0.0.40
codegen_flags: <defaults>
</compile_context>

<pallas_src>
import math

import jax
import jax.numpy as jnp
from jax.experimental import pallas as pl
from jax.experimental.pallas import tpu as pltpu


_TARGET_TILE_BYTES = 2 << 20   # 2 MiB tiles: HBM-roofline plateau; safe on
                               # v5e (16 MiB scoped VMEM), v6e, and v7x (64 MiB phys).
_MIN_GRID_STEPS = 4            # >= 2 grid steps per TensorCore on v7x megacore.
_WHOLE_ARRAY_BYTES = 8 << 20   # ragged fallback: single whole-array block cap.


def _negate_kernel(y_ref, grad_ref):
    """grad = mean(t, y) = -y  (forward direction)."""
    grad_ref[...] = -y_ref[...]


def _round_up(x, m):
    return (x + m - 1) // m * m


def _alias(donate):
    return {0: 0} if donate else {}


def _negate_slab(y2, donate):
    """Negate a lane-dense (rows, lane) slab; `lane` is a multiple of 128."""
    rows, lane = y2.shape
    itemsize = jnp.dtype(y2.dtype).itemsize
    sub = max(8, 32 // itemsize)  # sublane multiple: f32 -> 8, bf16 -> 16, int8 -> 32

    if rows <= sub:
        tile_rows = rows  # full-extent sublane block (allowed for any size)
    else:
        # Fill ~2 MiB per tile ...
        budget_rows = max(sub, (_TARGET_TILE_BYTES // (lane * itemsize)) // sub * sub)
        # ... but keep >= _MIN_GRID_STEPS grid steps when the row count allows,
        # so both v7x TensorCores stream (parallel grid axis).
        split_rows = max(sub, (pl.cdiv(rows, _MIN_GRID_STEPS) // sub) * sub)
        tile_rows = min(budget_rows, split_rows, _round_up(rows, sub))

    grid = (pl.cdiv(rows, tile_rows),)  # partial last block is masked by Pallas
    return pl.pallas_call(
        _negate_kernel,
        out_shape=jax.ShapeDtypeStruct((rows, lane), y2.dtype),
        grid=grid,
        in_specs=[pl.BlockSpec((tile_rows, lane), lambda i: (i, 0))],
        out_specs=pl.BlockSpec((tile_rows, lane), lambda i: (i, 0)),
        input_output_aliases=_alias(donate),
        compiler_params=pltpu.CompilerParams(dimension_semantics=("parallel",)),
    )(y2)


def _negate_ragged(y, donate):
    """Total element count not a multiple of 128: no lane-aligned slab exists
    without a pad copy, so operate on the original shape.  Blocks that span the
    full trailing dims are exempt from the (8,128) alignment rule."""
    shape, nd = y.shape, y.ndim
    itemsize = jnp.dtype(y.dtype).itemsize

    if nd >= 2 and shape[0] >= 2:
        inner = math.prod(shape[1:])
        inner_bytes = inner * itemsize
        if inner_bytes <= _TARGET_TILE_BYTES:
            lead = shape[0]
            t0 = max(1, min(_TARGET_TILE_BYTES // inner_bytes,
                            pl.cdiv(lead, _MIN_GRID_STEPS)))
            if nd == 2:
                # 2-D: the leading block dim is the sublane dim -> must be a
                # multiple of 8 or the full extent; partial last block is masked.
                t0 = lead if lead <= 8 else max(8, (t0 // 8) * 8)
            block = (t0,) + shape[1:]
            idx = lambda i: (i,) + (0,) * (nd - 1)
            return pl.pallas_call(
                _negate_kernel,
                out_shape=jax.ShapeDtypeStruct(shape, y.dtype),
                grid=(pl.cdiv(lead, t0),),
                in_specs=[pl.BlockSpec(block, idx)],
                out_specs=pl.BlockSpec(block, idx),
                input_output_aliases=_alias(donate),
                compiler_params=pltpu.CompilerParams(
                    dimension_semantics=("parallel",)),
            )(y)

    if y.size * itemsize <= _WHOLE_ARRAY_BYTES:
        # Small ragged (incl. 1-D): one whole-array block, no grid, no padding.
        return pl.pallas_call(
            _negate_kernel,
            out_shape=jax.ShapeDtypeStruct(shape, y.dtype),
            input_output_aliases=_alias(donate),
        )(y)

    # TODO(synk): pathological large ragged shapes (huge 1-D with size % 128 != 0
    # or a single huge trailing slice) fall back to a padded lane-dense slab,
    # which costs extra HBM pad/slice passes.  Not expected for SDE latents.
    n = y.size
    lane = 512
    rows = pl.cdiv(n, lane)
    flat = jnp.pad(y.reshape(-1), (0, rows * lane - n))
    out = _negate_slab(flat.reshape(rows, lane), donate=True)
    return out.reshape(-1)[:n].reshape(shape)


def gauss_prior_forward(t_local, y, backwards=False, *, donate_input=False):
    """Pallas implementation of GaussPriorFunc.forward(t_local, y, backwards)
    with the OU-prior drift mean(t, y) = -y.

    t_local is accepted for signature fidelity; the OU drift does not depend on
    it.  `backwards` must be a static Python bool (kernel selection is done at
    trace time).  Set donate_input=True only when `y` is dead after the call:
    it lets the output reuse y's HBM buffer (input_output_aliases={0: 0});
    while y is live, XLA would have to insert a defensive copy instead.
    """
    del t_local
    y = jnp.asarray(y)

    if backwards:
        # grad = -mean(t, y) = y.  Arrays are immutable -> identity, no kernel,
        # no HBM traffic.
        return y

    if y.ndim == 0:
        return -y  # degenerate scalar: not worth a kernel launch

    n = y.size
    itemsize = jnp.dtype(y.dtype).itemsize
    sub = max(8, 32 // itemsize)
    last = y.shape[-1]

    if (y.ndim >= 2 and last % 128 == 0
            and last * itemsize * sub <= _TARGET_TILE_BYTES):
        # Fast path: last dim already lane-aligned -> collapse leading dims only
        # (minor-dim layout unchanged), no padding, no tail slice.
        return _negate_slab(y.reshape(-1, last), donate_input).reshape(y.shape)

    if n % 128 == 0:
        # Lane-dense flattened slab, no padding / tail slice needed.
        lane = next(l for l in (512, 256, 128) if n % l == 0)
        return _negate_slab(y.reshape(n // lane, lane), donate_input).reshape(y.shape)

    return _negate_ragged(y, donate_input)


def sample_next_point_from_prior(t_local, y):
    """Mirrors GaussPriorFunc.sample_next_point_from_prior (= get_ode_gradient_nn)."""
    return gauss_prior_forward(t_local, y, backwards=False)


if __name__ == "__main__":
    key = jax.random.PRNGKey(0)
    t_local = 0.5

    # Small shape consistent with the module: batch=2, seq=8, hidden=32.
    B, S, D = 2, 8, 32
    y = jax.random.normal(key, (B, S, D), dtype=jnp.float32)

    grad_fwd = gauss_prior_forward(t_local, y, backwards=False)
    grad_bwd = gauss_prior_forward(t_local, y, backwards=True)
    jax.block_until_ready(grad_fwd)
    assert grad_fwd.shape == y.shape and grad_fwd.dtype == y.dtype
    assert jnp.allclose(grad_fwd, -y)
    assert jnp.allclose(grad_bwd, y)

    # Lane-aligned last dim (direct reshape path), bf16, multi-step grid.
    y_b = jax.random.normal(jax.random.PRNGKey(1), (4, 16, 256)).astype(jnp.bfloat16)
    g_b = gauss_prior_forward(t_local, y_b)
    jax.block_until_ready(g_b)
    assert g_b.dtype == jnp.bfloat16 and bool(jnp.array_equal(g_b, -y_b))

    # Ragged total (693 elements, not a multiple of 128): blocks over the leading
    # dim, full trailing dims, no pad / slice.
    y_odd = jax.random.normal(jax.random.PRNGKey(2), (3, 7, 33), dtype=jnp.float32)
    g_odd = gauss_prior_forward(t_local, y_odd)
    jax.block_until_ready(g_odd)
    assert g_odd.shape == y_odd.shape and jnp.allclose(g_odd, -y_odd)

    # Ragged 1-D: single whole-array block.
    y_1d = jax.random.normal(jax.random.PRNGKey(3), (333,), dtype=jnp.float32)
    g_1d = gauss_prior_forward(t_local, y_1d)
    jax.block_until_ready(g_1d)
    assert jnp.allclose(g_1d, -y_1d)

    # donate_input: output may reuse the input's HBM buffer (throwaway copy).
    expected = -y
    y_dead = y + 0.0
    g_dn = gauss_prior_forward(t_local, y_dead, donate_input=True)
    jax.block_until_ready(g_dn)
    assert jnp.allclose(g_dn, expected)

    # sample_next_point_from_prior mirrors the forward path.
    nxt = sample_next_point_from_prior(t_local, y)
    jax.block_until_ready(nxt)
    assert jnp.allclose(nxt, -y)

    print("KERNEL_OK")
</pallas_src>

<mosaic_0001>
module attributes {stable_mosaic.version = 11 : i64} {
  func.func @_negate_kernel(%arg0: i32, %arg1: memref<1x512xf32, #tpu.memory_space<vmem>>, %arg2: memref<1x512xf32, #tpu.memory_space<vmem>>) attributes {dimension_semantics = [#tpu.dimension_semantics<parallel>], iteration_bounds = array<i64: 1>, scalar_prefetch = 0 : i64, scratch_operands = 0 : i64, tpu.core_type = #tpu.core_type<tc>, window_params = [{transform_indices = @transform_0, window_bounds = array<i64: 1, 512>}, {transform_indices = @transform_1, window_bounds = array<i64: 1, 512>}]} {
    %c0 = arith.constant 0 : index
    %c0_0 = arith.constant 0 : index
    %0 = vector.load %arg1[%c0, %c0_0] : memref<1x512xf32, #tpu.memory_space<vmem>>, vector<1x512xf32>
    %cst = arith.constant 0.000000e+00 : f32
    %1 = vector.broadcast %cst : f32 to vector<1x512xf32>
    %2 = arith.subf %1, %0 : vector<1x512xf32>
    %c0_1 = arith.constant 0 : index
    %c0_2 = arith.constant 0 : index
    %3 = vector.load %arg2[%c0_1, %c0_2] : memref<1x512xf32, #tpu.memory_space<vmem>>, vector<1x512xf32>
    tpu.vector_store %arg2[%c0_1, %c0_2], %2 {strides = array<i32>} : memref<1x512xf32, #tpu.memory_space<vmem>>, vector<1x512xf32>,
    return
  }
  func.func @transform_0(%arg0: i32) -> (i32, i32) {
    %c0_i32 = arith.constant 0 : i32
    %c0_i32_0 = arith.constant 0 : i32
    return %arg0, %c0_i32 : i32, i32
  }
  func.func @transform_1(%arg0: i32) -> (i32, i32) {
    %c0_i32 = arith.constant 0 : i32
    %c0_i32_0 = arith.constant 0 : i32
    return %arg0, %c0_i32 : i32, i32
  }
}

</mosaic_0001>

<bundles_post_ra>
// kernel: tpu_custom_call.1
= control target key start
LH: loop header
LB: loop body
LE: loop exit
PB: predicated region body
PF: predicated region fallthrough
CT: control target
= control target key end

     0   :  { %6 = vsyncpa [#allocation3], 0  ;;  %s129_s0 = inlined_call_operand.hbm [shape: f32[1,512], index: 0, kind: input, shape index: {}]   ;;  %s130_s1 = inlined_call_operand.hbm [shape: f32[1,512], index: 1, kind: output, shape index: {}]  }
   0x1   :  { %7 = vsyncpa [#allocation4], 0  ;;  %s93_s6 = smov [#allocation2]   ;;  %s45_s10 = scalar_lea.hbm %s129_s0, 64 }
   0x2   :  { %s14_s7 = sshll.u32 %s93_s6, 4  ;;  %p46_p0 = scmp.ne.s32.totalorder %s129_s0, %s45_s10  ;;  %s15_s7 = int_to_ptr.vmem [resolvable:$true] %s14_s7 }
   0x3   :  { %p49_p1 = scmp.lt.u32.totalorder %s45_s10, %s129_s0 }
   0x5   :  { %p51_p2 = pnand %p49_p1, %p46_p0 }
   0x7   :  { %54 = shalt.err (!%p51_p2)
}
   0x8   :  { %s55_s15 = scalar_lea.vmem %s15_s7, 64  ;;  %p60_p4 = scmp.lt.s32.totalorder %s15_s7, %s15_s7 }
   0x9   :  { %p56_p3 = scmp.ne.s32.totalorder %s15_s7, %s55_s15  ;;  %p61_p5 = scmp.lt.s32.totalorder %s55_s15, %s55_s15 }
   0xb   :  { %p62_p6 = por %p61_p5, %p60_p4 }
   0xd   :  { %p63_p7 = pnand %p62_p6, %p56_p3 }
   0xf   :  { %66 = shalt.err (!%p63_p7)
}
  0x10   :  { %17 = dma.hbm_to_vmem [thread:$0]  %s129_s0, 64, %s15_s7, [#allocation3]  }
  0x11   :  { %89 = dma.done.wait [#allocation3], 64  }
  0x12   :  { %90 = vsyncadd [#allocation3], 4294967232  ;;  %v23_v0 = vlaneseq  ;;  %s94_s18 = smov [#allocation5]   ;;  %v21_v1 = vld [vmem:[#allocation2] sm:$0xf] }
  0x13   :  { %s34_s19 = sshll.u32 %s94_s18, 4  ;;  %v22_v2 = vsub.f32 0.0, %v21_v1  ;;  %s35_s19 = int_to_ptr.vmem [resolvable:$true] %s34_s19 }
  0x14   :  { %vm25_vm0 = vcmp.lt.s32.totalorder %v23_v0, 512  ;;  %s67_s20 = scalar_lea.vmem %s35_s19, 64  ;;  %p72_p9 = scmp.lt.s32.totalorder %s35_s19, %s35_s19 }
  0x15   :  { %27 = vst.msk [vmem:[#allocation5] sm:$0xf] %vm25_vm0, %v22_v2  ;;  %p68_p8 = scmp.ne.s32.totalorder %s35_s19, %s67_s20  ;;  %p73_p10 = scmp.lt.s32.totalorder %s67_s20, %s67_s20 }
  0x17   :  { %p74_p11 = por %p73_p10, %p72_p9 }
  0x19   :  { %p75_p12 = pnand %p74_p11, %p68_p8 }
  0x1b   :  { %78 = shalt.err (!%p75_p12)
}
  0x1c   :  { %s79_s0 = scalar_lea.hbm %s130_s1, 64 }
  0x1d   :  { %p80_p13 = scmp.ne.s32.totalorder %s130_s1, %s79_s0  ;;  %p83_p0 = scmp.lt.u32.totalorder %s79_s0, %s130_s1 }
  0x1f   :  { %p85_p1 = pnand %p83_p0, %p80_p13 }
  0x21   :  { %88 = shalt.err (!%p85_p1)
}
  0x22   :  { %37 = dma.vmem_to_hbm [thread:$0]  %s35_s19, 64, %s130_s1, [#allocation4]  }
  0x23   :  { %91 = dma.done.wait [#allocation4], 64  }
  0x24   :  { %92 = vsyncadd [#allocation4], 4294967232 }
  0x25   :  { %41 = vsyncpa [#allocation3], 1 }
  0x26   :  { %42 = vsyncpa [#allocation4], 1 }

</bundles_post_ra>
